<compile_context>
chip_gen: v5e
topology: v5e:2x2
jax: 0.10.0
libtpu: 0.0.40
codegen_flags: <defaults>
</compile_context>

<pallas_src>
import functools

import jax
import jax.numpy as jnp
from jax.experimental import pallas as pl
from jax.experimental.pallas import tpu as pltpu

LOG_SIG_MAX = 2.0
LOG_SIG_MIN = -20.0


def _round_up(x, m):
    return ((x + m - 1) // m) * m


def _mlp_base_kernel(obs_ref, act_ref, w1o_ref, w1a_ref, b1_ref,
                     w2_ref, b2_ref, wht_ref, bht_ref, out_ref, *, embed_size):
    cdt = w1o_ref.dtype  # MXU compute dtype (bf16)

    # Layer 1: split-input matmul replaces concat([obs, action]) @ W1.
    # f32 activations are cast to bf16 here (no separate wrapper cast pass).
    h1 = jnp.dot(obs_ref[...].astype(cdt), w1o_ref[...],
                 preferred_element_type=jnp.float32)
    h1 = h1 + jnp.dot(act_ref[...].astype(cdt), w1a_ref[...],
                      preferred_element_type=jnp.float32)
    h1 = jnp.maximum(h1 + b1_ref[...], 0.0)

    # Layer 2.
    h2 = jnp.dot(h1.astype(cdt), w2_ref[...],
                 preferred_element_type=jnp.float32) + b2_ref[...]
    h2 = jnp.maximum(h2, 0.0)

    # Fused, transposed heads: (2E, H) @ (H, TB) -> (2E, TB).  The h2
    # transpose runs on the XLU (slack here); the (2E, TB) store is
    # lane-dense (TB lanes instead of 2E masked lanes).
    heads_t = jnp.dot(wht_ref[...], h2.astype(cdt).T,
                      preferred_element_type=jnp.float32) + bht_ref[...]

    # Rows >= E are log_std -> clamp + exp; rows < E are mean.
    row = jax.lax.broadcasted_iota(jnp.int32, heads_t.shape, dimension=0)
    std_t = jnp.exp(jnp.clip(heads_t, LOG_SIG_MIN, LOG_SIG_MAX))
    out_ref[...] = jnp.where(row >= embed_size, std_t, heads_t).astype(out_ref.dtype)


def prepare_params(params, num_inputs, compute_dtype=jnp.bfloat16):
    """One-time weight packing: split W1, fuse+transpose heads, cast to bf16."""
    w1, b1, w2, b2, wm, bm, ws, bs = params
    w1o = w1[:num_inputs].astype(compute_dtype)                 # (d_obs, H)
    w1a = w1[num_inputs:].astype(compute_dtype)                 # (d_act, H)
    wht = jnp.concatenate([wm, ws], axis=1).T.astype(compute_dtype)   # (2E, H)
    bht = jnp.concatenate([bm, bs], axis=1).T.astype(jnp.float32)     # (2E, 1)
    return (w1o, w1a, b1.astype(jnp.float32), w2.astype(compute_dtype),
            b2.astype(jnp.float32), wht, bht)


def _choose_tile(B, block_b):
    """Batch tile: multiple of 128 when tiled (lane-dense transposed output),
    and >= 2 grid blocks whenever possible so both v7x TensorCores get work."""
    block_b = max(128, (block_b // 128) * 128)
    if B <= 128:
        return B, 1                      # single block; dims equal full extents
    half = _round_up(pl.cdiv(B, 2), 128)
    tb = min(block_b, half)
    return tb, pl.cdiv(B, tb)


def _vmem_limit_bytes(tb, d_obs, d_act, H, two_e):
    """Rough per-block VMEM footprint; return a limit only when the default
    scoped VMEM (16 MiB on v5e) would be tight."""
    def padded(rows, cols, itemsize):
        return _round_up(max(rows, 1), 8) * _round_up(max(cols, 1), 128) * itemsize

    io = 2 * (padded(tb, d_obs, 4) + padded(tb, d_act, 4) + padded(two_e, tb, 4))
    w = (padded(d_obs, H, 2) + padded(d_act, H, 2) + padded(H, H, 2)
         + padded(two_e, H, 2) + 2 * padded(1, H, 4) + padded(two_e, 1, 4))
    tmp = (4 * padded(tb, H, 4) + 2 * padded(tb, H, 2)
           + padded(H, tb, 2) + 2 * padded(two_e, tb, 4))
    est = io + w + tmp
    if est <= 12 * 1024 * 1024:
        return None                      # comfortably inside every default
    return min(2 * est, 48 * 1024 * 1024)  # headroom, capped for v7x (64 MiB phys)


@functools.partial(jax.jit, static_argnames=("block_b",))
def mlp_base_forward(obs, action, packed_params, *, block_b=2048):
    """Pallas-backed MLPBase.forward. Returns (mean, std)."""
    w1o, w1a, b1, w2, b2, wht, bht = packed_params
    B, d_obs = obs.shape
    d_act = action.shape[1]
    H = w2.shape[0]
    two_e = wht.shape[0]
    E = two_e // 2

    tb, nblk = _choose_tile(B, block_b)

    def batch_spec(feat):
        return pl.BlockSpec((tb, feat), lambda i: (i, 0))

    def const_spec(shape):
        return pl.BlockSpec(shape, lambda i: (0,) * len(shape))

    d_in = d_obs + d_act
    flops = 2 * B * (d_in * H + H * H + H * two_e)
    transcendentals = B * two_e
    bytes_accessed = (4 * B * d_in                               # obs/act (f32)
                      + 2 * (d_in * H + H * H + H * two_e)       # weights (bf16)
                      + 4 * (2 * H + two_e)                      # biases  (f32)
                      + 4 * B * two_e)                           # output  (f32)

    out = pl.pallas_call(
        functools.partial(_mlp_base_kernel, embed_size=E),
        out_shape=jax.ShapeDtypeStruct((two_e, B), jnp.float32),
        grid=(nblk,),
        in_specs=[
            batch_spec(d_obs),            # obs (f32)
            batch_spec(d_act),            # action (f32)
            const_spec(w1o.shape),        # W1[:d_obs]  (bf16)
            const_spec(w1a.shape),        # W1[d_obs:]  (bf16)
            const_spec(b1.shape),         # b1 (f32)
            const_spec(w2.shape),         # W2 (bf16)
            const_spec(b2.shape),         # b2 (f32)
            const_spec(wht.shape),        # [Wm|Ws]^T (bf16)
            const_spec(bht.shape),        # [bm|bs]^T (f32)
        ],
        out_specs=pl.BlockSpec((two_e, tb), lambda i: (0, i)),
        compiler_params=pltpu.CompilerParams(
            dimension_semantics=("parallel",),
            vmem_limit_bytes=_vmem_limit_bytes(tb, d_obs, d_act, H, two_e)),
        cost_estimate=pl.CostEstimate(flops=flops,
                                      transcendentals=transcendentals,
                                      bytes_accessed=bytes_accessed),
    )(obs, action, w1o, w1a, b1, w2, b2, wht, bht)

    mean = out[:E, :].T
    std = out[E:, :].T
    return mean, std


def xavier_uniform(key, fan_in, fan_out, gain=1.0, dtype=jnp.float32):
    # Matches torch.nn.init.xavier_uniform_ with gain=1.
    bound = gain * jnp.sqrt(6.0 / (fan_in + fan_out))
    return jax.random.uniform(key, (fan_in, fan_out), dtype=dtype,
                              minval=-bound, maxval=bound)


def init_params(key, in_dim, hidden_size, embed_size):
    k1, k2, k3, k4 = jax.random.split(key, 4)
    # Weights stored as (in, out); biases zero (weights_init_ constant_(bias,0)),
    # kept as (1, out) rows so operands are 2-D.
    w1 = xavier_uniform(k1, in_dim, hidden_size)
    b1 = jnp.zeros((1, hidden_size), jnp.float32)
    w2 = xavier_uniform(k2, hidden_size, hidden_size)
    b2 = jnp.zeros((1, hidden_size), jnp.float32)
    wm = xavier_uniform(k3, hidden_size, embed_size)
    bm = jnp.zeros((1, embed_size), jnp.float32)
    ws = xavier_uniform(k4, hidden_size, embed_size)
    bs = jnp.zeros((1, embed_size), jnp.float32)
    return (w1, b1, w2, b2, wm, bm, ws, bs)


def reference_forward_f32(obs, action, params):
    # Pure-f32 JAX reference (module semantics).
    w1, b1, w2, b2, wm, bm, ws, bs = params
    x = jnp.concatenate([obs, action], axis=1)
    h1 = jnp.maximum(x @ w1 + b1, 0.0)
    h2 = jnp.maximum(h1 @ w2 + b2, 0.0)
    mean = h2 @ wm + bm
    log_std = jnp.clip(h2 @ ws + bs, LOG_SIG_MIN, LOG_SIG_MAX)
    return mean, jnp.exp(log_std)


def reference_forward_bf16(obs, action, params):
    # Mirrors kernel numerics: bf16 matmul inputs, f32 accumulate/elementwise.
    w1, b1, w2, b2, wm, bm, ws, bs = params
    bf = jnp.bfloat16

    def dot(a, b):
        return jnp.dot(a.astype(bf), b.astype(bf),
                       preferred_element_type=jnp.float32)

    x = jnp.concatenate([obs, action], axis=1)
    h1 = jnp.maximum(dot(x, w1) + b1, 0.0)
    h2 = jnp.maximum(dot(h1, w2) + b2, 0.0)
    mean = dot(h2, wm) + bm
    log_std = jnp.clip(dot(h2, ws) + bs, LOG_SIG_MIN, LOG_SIG_MAX)
    return mean, jnp.exp(log_std)


if __name__ == "__main__":
    # Small shapes consistent with MLPBase(num_inputs, ..., action_space, ...):
    batch = 8
    num_inputs = 16     # observation dim
    action_dim = 4      # action_space.shape[0]
    hidden_size = 64
    embed_size = 1

    key = jax.random.PRNGKey(0)
    k_obs, k_act, k_params, k_obs2, k_act2 = jax.random.split(key, 5)

    obs = jax.random.normal(k_obs, (batch, num_inputs), jnp.float32)
    action = jax.random.normal(k_act, (batch, action_dim), jnp.float32)
    params = init_params(k_params, num_inputs + action_dim, hidden_size,
                         embed_size)
    packed = prepare_params(params, num_inputs)   # one-time weight packing

    mean, std = mlp_base_forward(obs, action, packed)
    jax.block_until_ready((mean, std))

    ref_mean, ref_std = reference_forward_bf16(obs, action, params)
    f32_mean, f32_std = reference_forward_f32(obs, action, params)

    assert mean.shape == (batch, embed_size) and std.shape == (batch, embed_size)
    # Tight check against the bf16-matched reference.
    assert jnp.allclose(mean, ref_mean, atol=2e-4, rtol=2e-4)
    assert jnp.allclose(std, ref_std, atol=2e-4, rtol=2e-4)
    # Looser semantic check against the pure-f32 module math.
    assert jnp.allclose(mean, f32_mean, atol=5e-2, rtol=5e-2)
    assert jnp.allclose(std, f32_std, atol=5e-2, rtol=5e-2)

    # Exercise the tiled path: >= 2 grid blocks (v7x megacore) + partial last block.
    big_b = 320
    obs2 = jax.random.normal(k_obs2, (big_b, num_inputs), jnp.float32)
    act2 = jax.random.normal(k_act2, (big_b, action_dim), jnp.float32)
    mean2, std2 = mlp_base_forward(obs2, act2, packed, block_b=256)
    jax.block_until_ready((mean2, std2))
    ref_mean2, ref_std2 = reference_forward_bf16(obs2, act2, params)
    assert mean2.shape == (big_b, embed_size) and std2.shape == (big_b, embed_size)
    assert jnp.allclose(mean2, ref_mean2, atol=2e-4, rtol=2e-4)
    assert jnp.allclose(std2, ref_std2, atol=2e-4, rtol=2e-4)

    # TODO(synk): act()/rsample (Normal sampling, tanh squashing) and the Adam
    # update() are training/sampling utilities outside forward(); not kernelized.
    print("KERNEL_OK")
</pallas_src>

<mosaic_0001>
module attributes {stable_mosaic.version = 11 : i64} {
  func.func @_mlp_base_kernel(%arg0: i32, %arg1: memref<8x16xf32, #tpu.memory_space<vmem>>, %arg2: memref<8x4xf32, #tpu.memory_space<vmem>>, %arg3: memref<16x64xbf16, #tpu.memory_space<vmem>>, %arg4: memref<4x64xbf16, #tpu.memory_space<vmem>>, %arg5: memref<1x64xf32, #tpu.memory_space<vmem>>, %arg6: memref<64x64xbf16, #tpu.memory_space<vmem>>, %arg7: memref<1x64xf32, #tpu.memory_space<vmem>>, %arg8: memref<2x64xbf16, #tpu.memory_space<vmem>>, %arg9: memref<2x1xf32, #tpu.memory_space<vmem>>, %arg10: memref<2x8xf32, #tpu.memory_space<vmem>>) attributes {dimension_semantics = [#tpu.dimension_semantics<parallel>], iteration_bounds = array<i64: 1>, scalar_prefetch = 0 : i64, scratch_operands = 0 : i64, tpu.core_type = #tpu.core_type<tc>, window_params = [{transform_indices = @transform_0, window_bounds = array<i64: 8, 16>}, {transform_indices = @transform_1, window_bounds = array<i64: 8, 4>}, {pipeline_mode = #tpu.pipeline_mode<synchronous>, transform_indices = @transform_2, window_bounds = array<i64: 16, 64>}, {pipeline_mode = #tpu.pipeline_mode<synchronous>, transform_indices = @transform_3, window_bounds = array<i64: 4, 64>}, {pipeline_mode = #tpu.pipeline_mode<synchronous>, transform_indices = @transform_4, window_bounds = array<i64: 1, 64>}, {pipeline_mode = #tpu.pipeline_mode<synchronous>, transform_indices = @transform_5, window_bounds = array<i64: 64, 64>}, {pipeline_mode = #tpu.pipeline_mode<synchronous>, transform_indices = @transform_6, window_bounds = array<i64: 1, 64>}, {pipeline_mode = #tpu.pipeline_mode<synchronous>, transform_indices = @transform_7, window_bounds = array<i64: 2, 64>}, {pipeline_mode = #tpu.pipeline_mode<synchronous>, transform_indices = @transform_8, window_bounds = array<i64: 2, 1>}, {transform_indices = @transform_9, window_bounds = array<i64: 2, 8>}]} {
    %c0 = arith.constant 0 : index
    %c0_0 = arith.constant 0 : index
    %0 = vector.load %arg1[%c0, %c0_0] : memref<8x16xf32, #tpu.memory_space<vmem>>, vector<8x16xf32>
    %1 = arith.truncf %0 : vector<8x16xf32> to vector<8x16xbf16>
    %c0_1 = arith.constant 0 : index
    %c0_2 = arith.constant 0 : index
    %2 = vector.load %arg3[%c0_1, %c0_2] : memref<16x64xbf16, #tpu.memory_space<vmem>>, vector<16x64xbf16>
    %cst = arith.constant dense<0.000000e+00> : vector<8x64xf32>
    %3 = tpu.matmul %1, %2, %cst {dimension_numbers = #tpu.dot_dimension_numbers<[1], [0], [0], [1], [0, 0, 1, 1], [], []>} : vector<8x16xbf16>, vector<16x64xbf16>, vector<8x64xf32> -> vector<8x64xf32>
    %c0_3 = arith.constant 0 : index
    %c0_4 = arith.constant 0 : index
    %4 = vector.load %arg2[%c0_3, %c0_4] : memref<8x4xf32, #tpu.memory_space<vmem>>, vector<8x4xf32>
    %5 = arith.truncf %4 : vector<8x4xf32> to vector<8x4xbf16>
    %c0_5 = arith.constant 0 : index
    %c0_6 = arith.constant 0 : index
    %6 = vector.load %arg4[%c0_5, %c0_6] : memref<4x64xbf16, #tpu.memory_space<vmem>>, vector<4x64xbf16>
    %cst_7 = arith.constant dense<0.000000e+00> : vector<8x64xf32>
    %7 = tpu.matmul %5, %6, %cst_7 {dimension_numbers = #tpu.dot_dimension_numbers<[1], [0], [0], [1], [0, 0, 1, 1], [], []>} : vector<8x4xbf16>, vector<4x64xbf16>, vector<8x64xf32> -> vector<8x64xf32>
    %8 = arith.addf %3, %7 : vector<8x64xf32>
    %c0_8 = arith.constant 0 : index
    %c0_9 = arith.constant 0 : index
    %9 = vector.load %arg5[%c0_8, %c0_9] : memref<1x64xf32, #tpu.memory_space<vmem>>, vector<1x64xf32>
    %10 = vector.broadcast %9 : vector<1x64xf32> to vector<8x64xf32>
    %11 = arith.addf %8, %10 : vector<8x64xf32>
    %cst_10 = arith.constant 0.000000e+00 : f32
    %12 = vector.broadcast %cst_10 : f32 to vector<8x64xf32>
    %13 = arith.maximumf %11, %12 : vector<8x64xf32>
    %14 = arith.truncf %13 : vector<8x64xf32> to vector<8x64xbf16>
    %c0_11 = arith.constant 0 : index
    %c0_12 = arith.constant 0 : index
    %15 = vector.load %arg6[%c0_11, %c0_12] : memref<64x64xbf16, #tpu.memory_space<vmem>>, vector<64x64xbf16>
    %cst_13 = arith.constant dense<0.000000e+00> : vector<8x64xf32>
    %16 = tpu.matmul %14, %15, %cst_13 {dimension_numbers = #tpu.dot_dimension_numbers<[1], [0], [0], [1], [0, 0, 1, 1], [], []>} : vector<8x64xbf16>, vector<64x64xbf16>, vector<8x64xf32> -> vector<8x64xf32>
    %c0_14 = arith.constant 0 : index
    %c0_15 = arith.constant 0 : index
    %17 = vector.load %arg7[%c0_14, %c0_15] : memref<1x64xf32, #tpu.memory_space<vmem>>, vector<1x64xf32>
    %18 = vector.broadcast %17 : vector<1x64xf32> to vector<8x64xf32>
    %19 = arith.addf %16, %18 : vector<8x64xf32>
    %cst_16 = arith.constant 0.000000e+00 : f32
    %20 = vector.broadcast %cst_16 : f32 to vector<8x64xf32>
    %21 = arith.maximumf %19, %20 : vector<8x64xf32>
    %c0_17 = arith.constant 0 : index
    %c0_18 = arith.constant 0 : index
    %22 = vector.load %arg8[%c0_17, %c0_18] : memref<2x64xbf16, #tpu.memory_space<vmem>>, vector<2x64xbf16>
    %23 = arith.truncf %21 : vector<8x64xf32> to vector<8x64xbf16>
    %24 = tpu.transpose %23, [1, 0] : vector<8x64xbf16> -> vector<64x8xbf16>
    %cst_19 = arith.constant dense<0.000000e+00> : vector<2x8xf32>
    %25 = tpu.matmul %22, %24, %cst_19 {dimension_numbers = #tpu.dot_dimension_numbers<[1], [0], [0], [1], [0, 0, 1, 1], [], []>} : vector<2x64xbf16>, vector<64x8xbf16>, vector<2x8xf32> -> vector<2x8xf32>
    %c0_20 = arith.constant 0 : index
    %c0_21 = arith.constant 0 : index
    %26 = vector.load %arg9[%c0_20, %c0_21] : memref<2x1xf32, #tpu.memory_space<vmem>>, vector<2x1xf32>
    %27 = vector.broadcast %26 : vector<2x1xf32> to vector<2x8xf32>
    %28 = arith.addf %25, %27 : vector<2x8xf32>
    %29 = tpu.iota {dimensions = array<i32: 0>} : vector<2x8xi32>
    %cst_22 = arith.constant -2.000000e+01 : f32
    %cst_23 = arith.constant 2.000000e+00 : f32
    %30 = vector.broadcast %cst_22 : f32 to vector<2x8xf32>
    %31 = arith.maximumf %30, %28 : vector<2x8xf32>
    %32 = vector.broadcast %cst_23 : f32 to vector<2x8xf32>
    %33 = arith.minimumf %32, %31 : vector<2x8xf32>
    %34 = math.exp %33 : vector<2x8xf32>
    %c1_i32 = arith.constant 1 : i32
    %35 = vector.broadcast %c1_i32 : i32 to vector<2x8xi32>
    %36 = arith.cmpi sge, %29, %35 : vector<2x8xi32>
    %37 = arith.select %36, %34, %28 : vector<2x8xi1>, vector<2x8xf32>
    %c0_24 = arith.constant 0 : index
    %c0_25 = arith.constant 0 : index
    %38 = vector.load %arg10[%c0_24, %c0_25] : memref<2x8xf32, #tpu.memory_space<vmem>>, vector<2x8xf32>
    tpu.vector_store %arg10[%c0_24, %c0_25], %37 {strides = array<i32>} : memref<2x8xf32, #tpu.memory_space<vmem>>, vector<2x8xf32>,
    return
  }
  func.func @transform_0(%arg0: i32) -> (i32, i32) {
    %c0_i32 = arith.constant 0 : i32
    %c0_i32_0 = arith.constant 0 : i32
    return %arg0, %c0_i32 : i32, i32
  }
  func.func @transform_1(%arg0: i32) -> (i32, i32) {
    %c0_i32 = arith.constant 0 : i32
    %c0_i32_0 = arith.constant 0 : i32
    return %arg0, %c0_i32 : i32, i32
  }
  func.func @transform_2(%arg0: i32) -> (i32, i32) {
    %c0_i32 = arith.constant 0 : i32
    %c0_i32_0 = arith.constant 0 : i32
    %c0_i32_1 = arith.constant 0 : i32
    return %c0_i32, %c0_i32_0 : i32, i32
  }
  func.func @transform_3(%arg0: i32) -> (i32, i32) {
    %c0_i32 = arith.constant 0 : i32
    %c0_i32_0 = arith.constant 0 : i32
    %c0_i32_1 = arith.constant 0 : i32
    return %c0_i32, %c0_i32_0 : i32, i32
  }
  func.func @transform_4(%arg0: i32) -> (i32, i32) {
    %c0_i32 = arith.constant 0 : i32
    %c0_i32_0 = arith.constant 0 : i32
    %c0_i32_1 = arith.constant 0 : i32
    return %c0_i32, %c0_i32_0 : i32, i32
  }
  func.func @transform_5(%arg0: i32) -> (i32, i32) {
    %c0_i32 = arith.constant 0 : i32
    %c0_i32_0 = arith.constant 0 : i32
    %c0_i32_1 = arith.constant 0 : i32
    return %c0_i32, %c0_i32_0 : i32, i32
  }
  func.func @transform_6(%arg0: i32) -> (i32, i32) {
    %c0_i32 = arith.constant 0 : i32
    %c0_i32_0 = arith.constant 0 : i32
    %c0_i32_1 = arith.constant 0 : i32
    return %c0_i32, %c0_i32_0 : i32, i32
  }
  func.func @transform_7(%arg0: i32) -> (i32, i32) {
    %c0_i32 = arith.constant 0 : i32
    %c0_i32_0 = arith.constant 0 : i32
    %c0_i32_1 = arith.constant 0 : i32
    return %c0_i32, %c0_i32_0 : i32, i32
  }
  func.func @transform_8(%arg0: i32) -> (i32, i32) {
    %c0_i32 = arith.constant 0 : i32
    %c0_i32_0 = arith.constant 0 : i32
    %c0_i32_1 = arith.constant 0 : i32
    return %c0_i32, %c0_i32_0 : i32, i32
  }
  func.func @transform_9(%arg0: i32) -> (i32, i32) {
    %c0_i32 = arith.constant 0 : i32
    %c0_i32_0 = arith.constant 0 : i32
    return %c0_i32, %arg0 : i32, i32
  }
}

</mosaic_0001>

<bundles_post_ra>
// kernel: mlp_base_forward.1
= control target key start
LH: loop header
LB: loop body
LE: loop exit
PB: predicated region body
PF: predicated region fallthrough
CT: control target
= control target key end

     0   :  { %14 = vsyncpa [#allocation3], 0  ;;  %s397_s0 = inlined_call_operand.vmem [shape: f32[8,16], index: 0, kind: input, shape index: {}]   ;;  %s398_s1 = inlined_call_operand.vmem [shape: f32[8,4], index: 1, kind: input, shape index: {}]   ;;  %s399_s2 = inlined_call_operand.vmem [shape: bf16[16,64], index: 2, kind: input, shape index: {}]   ;;  %s400_s3 = inlined_call_operand.hbm [shape: bf16[4,64], index: 3, kind: input, shape index: {}]   ;;  %s401_s4 = inlined_call_operand.vmem [shape: f32[1,64], index: 4, kind: input, shape index: {}]   ;;  %s402_s5 = inlined_call_operand.hbm [shape: bf16[64,64], index: 5, kind: input, shape index: {}]   ;;  %s403_s6 = inlined_call_operand.vmem [shape: f32[1,64], index: 6, kind: input, shape index: {}]   ;;  %s404_s7 = inlined_call_operand.vmem [shape: bf16[2,64], index: 7, kind: input, shape index: {}]   ;;  %s405_s8 = inlined_call_operand.vmem [shape: f32[2,1], index: 8, kind: input, shape index: {}]   ;;  %s406_s9 = inlined_call_operand.vmem [shape: f32[2,8], index: 9, kind: output, shape index: {}]  }
   0x1   :  { %s27_s11 = sshll.u32 %s400_s3, 4  ;;  %s28_s11 = int_to_ptr.hbm [resolvable:$true] %s27_s11 }
   0x2   :  { %15 = vsyncpa [#allocation5], 0  ;;  %s309_s12 = smov [#allocation2]   ;;  %s39_s16 = sshll.u32 %s402_s5, 4  ;;  %s40_s16 = int_to_ptr.hbm [resolvable:$true] %s39_s16 }
   0x3   :  { %s29_s13 = sshll.u32 %s309_s12, 4  ;;  %s310_s17 = smov [#allocation4]   ;;  %s30_s13 = int_to_ptr.vmem [resolvable:$true] %s29_s13 }
   0x4   :  { %32 = dma.hbm_to_vmem [thread:$0]  %s28_s11, 32, %s30_s13, [#allocation3]  }
   0x5   :  { %s41_s18 = sshll.u32 %s310_s17, 4  ;;  %s311_s19 = smov 64   ;;  %s42_s18 = int_to_ptr.vmem [resolvable:$true] %s41_s18 }
   0x6   :  { %s312_s20 = smov 4  }
   0x7   :  { %47 = dma.hbm_to_vmem [thread:$0]  %s40_s16, 512, %s42_s18, [#allocation5], %s311_s19, %s311_s19, %s312_s20  }
   0x8   :  { %305 = dma.done.wait [#allocation3], 32  }
   0x9   :  { %306 = vsyncadd [#allocation3], 4294967264 }
   0xa   :  { %307 = dma.done.wait [#allocation5], 512  }
   0xb   :  { %308 = vsyncadd [#allocation5], 4294966784  ;;  %vm74_vm0 = vcmask 1041408   ;;  %v69_v0 = vld [vmem:[#allocation2] sm:$0x3]  ;;  %vm70_vm1 = vcmask 31744   ;;  %v202_v34 = vlaneseq }
   0xc   :  { %v242_v1 = vld [vmem:[%s399_s2] sm:$0xff]  ;;  %v76_v3 = vsel %vm74_vm0, %v69_v0, 0  ;;  %vm97_vm2 = vcmask 130048   ;;  %v245_v8 = vld [vmem:[#allocation4 + $0x10] sm:$0xff]  ;;  %v244_v9 = vld [vmem:[#allocation4 + $0x8] sm:$0xff]  ;;  %vm157_vm3 = vcmask 523264  }
   0xd   :  { %v67_v2 = vld [vmem:[%s398_s1] sm:$0xff]  ;;  %85 = vmatpush.bf16.msra.mxu0 %v76_v3  ;;  %108 = vmatpush.bf16.msra.mxu1 %v242_v1  ;;  %v313_v21 = vmov 0   ;;  %v203_v38 = vshrl.u32 %v202_v34, 7  ;;  %vm210_vm5 = vcmask 58368  }
   0xe   :  { %v68_v4 = vpack.c.bf16 %v67_v2, %v67_v2  ;;  %v63_v5 = vld [vmem:[%s397_s0] sm:$0xff]  ;;  %252 = vset.pattern.permute.xlu0 %v313_v21 }
   0xf   :  { %v246_v6 = vld [vmem:[#allocation4 + $0x18] sm:$0xff]  ;;  %v64_v7 = vpack.c.bf16 %v63_v5, %v63_v5  ;;  %v243_v10 = vld [vmem:[#allocation4] sm:$0xff]  ;;  %vm208_vm4 = vcmp.ge.s32.totalorder %v203_v38, 1 }
  0x10   :  { %165 = vmatpush.bf16.msra.mxu2 %v246_v6  ;;  %218 = vmatmul.msk.bf16.vlgmr.msra.gmra.mxu0 %vm70_vm1, %v68_v4  ;;  %v253_v11 = vld [vmem:[%s401_s4] ss:$0 sm:$0xff] }
  0x11   :  { %223 = vmatmul.msk.bf16.vlgmr.msra.gmra.mxu1 %vm97_vm2, %v64_v7  ;;  %v177_v20 = vld [vmem:[%s405_s8] sm:$0x3] }
  0x12   :  { %180 = vperm.xlu0 %252, %v177_v20   ;;  %v254_v22 = vld [vmem:[%s403_s6] ss:$0 sm:$0xff] }
  0x13   :  { %v175_v29 = vld [vmem:[%s404_s7] sm:$0x1] }
  0x14   :  { %166 = vmatpush.bf16.msra.mxu2 %v245_v8 }
  0x18   :  { %167 = vmatpush.bf16.msra.mxu2 %v244_v9 }
  0x1c   :  { %168 = vmatpush.bf16.msra.mxu2 %v243_v10 }
  0x84   :  { %v181_v30 = vpop.permute.xlu0 %180 }
  0x8d   :  { %v87_v12 = vpop.f32.mrf.mxu0 }
  0x8e   :  { %v110_v13 = vpop.f32.mrf.mxu1 }
  0x8f   :  { %v111_v14 = vadd.f32 %v110_v13, %v87_v12 }
  0x91   :  { %v118_v15 = vadd.f32 %v253_v11, %v111_v14 }
  0x93   :  { %v119_v16 = vmax.f32 %v118_v15, 0.0 }
  0x95   :  { %v120_v17 = vpack.c.bf16 %v119_v16, %v119_v16  ;;  %v89_v18 = vpop.f32.mrf.mxu0 }
  0x96   :  { %v112_v19 = vpop.f32.mrf.mxu1 }
  0x97   :  { %240 = vmatmul.msk.bf16.vlgmr.msra.gmra.mxu2 %vm157_vm3, %v120_v17 }
 0x11a   :  { %v170_v23 = vpop.f32.mrf.mxu2 }
 0x11b   :  { %v171_v24 = vadd.f32 %v254_v22, %v170_v23 }
 0x11d   :  { %v174_v25 = vmax.f32 %v171_v24, 0.0 }
 0x11f   :  { %v176_v26 = vpack.c.bf16 %v174_v25, %v174_v25 }
 0x121   :  { %v187_v27 = vsel %vm157_vm3, %v176_v26, 0 }
 0x122   :  { %v172_v28 = vpop.f32.mrf.mxu2  ;;  %196 = vmatpush.bf16.xpose.msra.mxu3 %v187_v27 }
 0x129   :  { %241 = vmatmul.msk.bf16.vlgmr.msra.gmra.mxu3 %vm157_vm3, %v175_v29 }
 0x1ac   :  { %v198_v31 = vpop.f32.mrf.mxu3 }
 0x1ad   :  { %v199_v32 = vadd.f32 %v198_v31, %v181_v30 }
 0x1af   :  { %v204_v33 = vmax.f32 %v199_v32, -20.0 }
 0x1b1   :  { %v205_v35 = vmin.f32 %v204_v33, 2.0 }
 0x1b3   :  { %v206_v36 = vmul.f32 1.442695, %v205_v35 }
 0x1b4   :  { %v200_v37 = vpop.f32.mrf.mxu3 }
 0x1b5   :  { %255 = vpow2.f32 %v206_v36 }
 0x1bb   :  { %v256_v39 = vpop.eup %255 }
 0x1bc   :  { %v209_v40 = vsel %vm208_vm4, %v256_v39, %v199_v32 }
 0x1bd   :  { %211 = vst.msk [vmem:[%s406_s9] sm:$0x3] %vm210_vm5, %v209_v40 }
 0x1be   :  { %216 = vsyncpa [#allocation3], 1 }
 0x1bf   :  { %217 = vsyncpa [#allocation5], 1 }

</bundles_post_ra>
